<compile_context>
chip_gen: v5e
topology: v5e:2x2
jax: 0.10.0
libtpu: 0.0.40
codegen_flags: <defaults>
</compile_context>

<pallas_src>
import functools

import jax
import jax.numpy as jnp
from jax.experimental import pallas as pl
from jax.experimental.pallas import tpu as pltpu


def _round_up(x, m):
    return ((x + m - 1) // m) * m


def _detect_tensorcores():
    """Best-effort TensorCores-per-chip (v7x-class chips expose 2)."""
    try:
        kind = jax.devices()[0].device_kind.lower()
    except Exception:  # pragma: no cover
        return 1
    return 2 if "v7" in kind else 1


def _dro_loss_kernel(p_ref, a_ref, n_ref, out_ref, w_acc, m_acc, *,
                     inv_denom, transpose_m,
                     n_a, n_n, lane_a, lane_n, tiles_a, tiles_n, num_tiles):
    k = pl.program_id(1)

    @pl.when(k == 0)
    def _init():
        w_acc[...] = jnp.zeros_like(w_acc)
        m_acc[...] = jnp.full_like(m_acc, -jnp.inf)

    def _acc_w():
        # Widen to f32 on the VPU; accumulate per-bag weighted sums.
        pa = p_ref[...].astype(jnp.float32) * a_ref[...].astype(jnp.float32)
        if n_a % lane_a != 0:  # static check: ragged last tile -> lane mask
            col = jax.lax.broadcasted_iota(jnp.int32, pa.shape, 1)
            pa = jnp.where(k * lane_a + col < n_a, pa, 0.0)
        w_acc[...] += jnp.sum(pa, axis=1, keepdims=True)          # [rows_a, 1]

    def _acc_m():
        nv = n_ref[...].astype(jnp.float32)
        if n_n % lane_n != 0:
            col = jax.lax.broadcasted_iota(jnp.int32, nv.shape, 1)
            nv = jnp.where(k * lane_n + col < n_n, nv, -jnp.inf)
        m_acc[...] = jnp.maximum(m_acc[...],
                                 jnp.max(nv, axis=1, keepdims=True))  # [B_n,1]

    # Per-array tile counts: skip updates once this array's tiles are done.
    if tiles_a == num_tiles:
        _acc_w()
    else:
        pl.when(k < tiles_a)(_acc_w)
    if tiles_n == num_tiles:
        _acc_m()
    else:
        pl.when(k < tiles_n)(_acc_m)

    @pl.when(k == num_tiles - 1)
    def _finalize():
        w = w_acc[...]                                  # [rows_a, 1]
        m = m_acc[...]                                  # [B_n, 1]
        # Total sum is orientation-invariant: transpose the statically
        # smaller per-bag vector (trace-time choice).
        if transpose_m:
            d = (1.0 - w) + jnp.transpose(m)            # [rows_a, B_n]
        else:
            d = (1.0 - jnp.transpose(w)) + m            # [B_n, rows_a]
        out_ref[0, 0] = jnp.sum(jnp.maximum(d, 0.0)) * inv_denom


def dro_loss_ref(abnormal_outputs, normal_outputs, p_values):
    """Pure-JAX reference mirroring the PyTorch loops exactly (f32 math)."""
    a = jnp.asarray(abnormal_outputs, jnp.float32)
    n = jnp.asarray(normal_outputs, jnp.float32)
    p = jnp.asarray(p_values, jnp.float32)
    w = jnp.sum(p * a, axis=1)                           # [B_a]
    m = jnp.max(n, axis=1)                               # [B_n]
    d = 1.0 - w[None, :] + m[:, None]                    # [B_n, B_a]
    d = jnp.where(d < 0.0, 0.0, d)
    return jnp.sum(d) / (m.shape[0] * w.shape[0])


def dro_loss(abnormal_outputs, normal_outputs, p_values, gamma=1.0, *,
             instance_tile=None, core_splits=None, prefer_xla_below=16384,
             vmem_budget_bytes=8 << 20):
    """Pallas TPU implementation of DROLoss.forward.

    abnormal_outputs : [B_a, N_a]   (any float dtype; streamed natively)
    normal_outputs   : [B_n, N_n]
    p_values         : [B_a, N_a]
    gamma is unused in the reference forward pass (kept for API parity).
    """
    del gamma  # unused by the reference forward()
    abnormal = jnp.asarray(abnormal_outputs)
    normal = jnp.asarray(normal_outputs)
    p_values = jnp.asarray(p_values)

    b_a, n_a = abnormal.shape
    b_n, n_n = normal.shape
    total_elems = 2 * b_a * n_a + b_n * n_n

    # Tiny problems: one fused XLA reduction beats the custom-call launch.
    if prefer_xla_below and total_elems < prefer_xla_below:
        return dro_loss_ref(abnormal, normal, p_values)

    inv_denom = 1.0 / float(b_n * b_a)

    # --- TensorCore split of the abnormal-bag axis (v7x megacore). ---------
    auto_split = core_splits is None
    splits = _detect_tensorcores() if auto_split else int(core_splits)
    num_splits = 1
    if splits > 1 and b_a % (8 * splits) == 0:
        input_bytes = (2 * b_a * n_a * abnormal.dtype.itemsize
                       + b_n * n_n * normal.dtype.itemsize)
        if (not auto_split) or input_bytes >= (4 << 20):
            num_splits = splits
    rows_a = b_a // num_splits

    # --- Lane tile from a double-buffered VMEM budget. ---------------------
    if instance_tile is not None:
        tile = max(128, _round_up(int(instance_tile), 128))
    else:
        bytes_per_lane = (2 * rows_a * abnormal.dtype.itemsize
                          + b_n * normal.dtype.itemsize)
        tile = (vmem_budget_bytes // (2 * max(bytes_per_lane, 1))) // 128 * 128
        tile = int(max(128, min(tile, 8192)))

    # Per-array tiling: full-array block when it fits in one tile (no mask),
    # else `tile`-wide blocks with an in-kernel mask on the ragged tail.
    lane_a, tiles_a = (n_a, 1) if n_a <= tile else (tile, pl.cdiv(n_a, tile))
    lane_n, tiles_n = (n_n, 1) if n_n <= tile else (tile, pl.cdiv(n_n, tile))
    num_tiles = max(tiles_a, tiles_n)

    kernel = functools.partial(
        _dro_loss_kernel,
        inv_denom=inv_denom,
        transpose_m=(b_n <= rows_a),
        n_a=n_a, n_n=n_n,
        lane_a=lane_a, lane_n=lane_n,
        tiles_a=tiles_a, tiles_n=tiles_n, num_tiles=num_tiles,
    )

    partials = pl.pallas_call(
        kernel,
        out_shape=jax.ShapeDtypeStruct((num_splits, 1), jnp.float32),
        grid_spec=pltpu.PrefetchScalarGridSpec(
            num_scalar_prefetch=0,
            grid=(num_splits, num_tiles),
            in_specs=[
                # p_values slice for this core's abnormal bags
                pl.BlockSpec((rows_a, lane_a),
                             lambda c, k: (c, jnp.minimum(k, tiles_a - 1))),
                # abnormal_outputs slice
                pl.BlockSpec((rows_a, lane_a),
                             lambda c, k: (c, jnp.minimum(k, tiles_a - 1))),
                # normal_outputs (full bag axis on every core)
                pl.BlockSpec((b_n, lane_n),
                             lambda c, k: (0, jnp.minimum(k, tiles_n - 1))),
            ],
            out_specs=pl.BlockSpec((1, 1), lambda c, k: (c, 0),
                                   memory_space=pltpu.SMEM),
            scratch_shapes=[
                pltpu.VMEM((rows_a, 1), jnp.float32),  # running weighted sums
                pltpu.VMEM((b_n, 1), jnp.float32),     # running per-bag maxes
            ],
        ),
        compiler_params=pltpu.CompilerParams(
            dimension_semantics=("parallel", "arbitrary"),
        ),
    )(p_values, abnormal, normal)

    # Partial pair-sums per core split; sum is exact (hinge separates per bag).
    return jnp.sum(partials)


if __name__ == "__main__":
    key = jax.random.PRNGKey(0)
    keys = jax.random.split(key, 6)

    # --- Small MIL shapes: exercise the Pallas single-step path and the
    #     XLA small-problem fast path. ------------------------------------
    B_a, N_a = 4, 16
    B_n, N_n = 3, 16
    abnormal = jax.random.normal(keys[0], (B_a, N_a), dtype=jnp.float32)
    normal = jax.random.normal(keys[1], (B_n, N_n), dtype=jnp.float32)
    p_raw = jax.random.uniform(keys[2], (B_a, N_a), dtype=jnp.float32)
    p_values = p_raw / jnp.sum(p_raw, axis=1, keepdims=True)

    ref = dro_loss_ref(abnormal, normal, p_values)
    got_pallas = jax.block_until_ready(
        dro_loss(abnormal, normal, p_values, gamma=1.0, prefer_xla_below=0))
    got_fast = jax.block_until_ready(
        dro_loss(abnormal, normal, p_values, gamma=1.0))
    assert jnp.allclose(got_pallas, ref, atol=1e-5, rtol=1e-5), (got_pallas, ref)
    assert jnp.allclose(got_fast, ref, atol=1e-5, rtol=1e-5), (got_fast, ref)

    # --- Longer instance axes: tiled reduction, ragged last tiles, and
    #     per-array tile counts (N_a -> 3 tiles, N_n -> 2 tiles at 512). ----
    B_a2, N_a2 = 16, 1200
    B_n2, N_n2 = 8, 1000
    abnormal2 = jax.random.normal(keys[3], (B_a2, N_a2), dtype=jnp.float32)
    normal2 = jax.random.normal(keys[4], (B_n2, N_n2), dtype=jnp.float32)
    p_raw2 = jax.random.uniform(keys[5], (B_a2, N_a2), dtype=jnp.float32)
    p_values2 = p_raw2 / jnp.sum(p_raw2, axis=1, keepdims=True)

    ref2 = dro_loss_ref(abnormal2, normal2, p_values2)
    got2 = jax.block_until_ready(
        dro_loss(abnormal2, normal2, p_values2, gamma=1.0, instance_tile=512))
    assert jnp.allclose(got2, ref2, atol=1e-4, rtol=1e-4), (got2, ref2)

    # Adaptive tile + explicit 2-way abnormal-bag split: exercises the
    # megacore ("parallel") code path; correct (just serial) on 1-TC chips.
    got3 = jax.block_until_ready(
        dro_loss(abnormal2, normal2, p_values2, gamma=1.0, core_splits=2))
    assert jnp.allclose(got3, ref2, atol=1e-4, rtol=1e-4), (got3, ref2)

    # bf16 inputs stream natively and are widened in-kernel (f32 accumulate).
    a_bf = abnormal2.astype(jnp.bfloat16)
    n_bf = normal2.astype(jnp.bfloat16)
    p_bf = p_values2.astype(jnp.bfloat16)
    ref4 = dro_loss_ref(a_bf, n_bf, p_bf)
    got4 = jax.block_until_ready(
        dro_loss(a_bf, n_bf, p_bf, gamma=1.0, instance_tile=512))
    assert jnp.allclose(got4, ref4, atol=1e-3, rtol=1e-3), (got4, ref4)

    print("KERNEL_OK")
</pallas_src>

<mosaic_0001>
module attributes {stable_mosaic.version = 11 : i64} {
  func.func @_dro_loss_kernel(%arg0: i32, %arg1: i32, %arg2: memref<4x16xf32, #tpu.memory_space<vmem>>, %arg3: memref<4x16xf32, #tpu.memory_space<vmem>>, %arg4: memref<3x16xf32, #tpu.memory_space<vmem>>, %arg5: memref<1x1xf32, #tpu.memory_space<smem>>, %arg6: memref<4x1xf32, #tpu.memory_space<vmem>>, %arg7: memref<3x1xf32, #tpu.memory_space<vmem>>) attributes {dimension_semantics = [#tpu.dimension_semantics<parallel>, #tpu.dimension_semantics<arbitrary>], iteration_bounds = array<i64: 1, 1>, scalar_prefetch = 0 : i64, scratch_operands = 2 : i64, tpu.core_type = #tpu.core_type<tc>, window_params = [{transform_indices = @transform_0, window_bounds = array<i64: 4, 16>}, {transform_indices = @transform_1, window_bounds = array<i64: 4, 16>}, {transform_indices = @transform_2, window_bounds = array<i64: 3, 16>}, {transform_indices = @transform_3, window_bounds = array<i64: 1, 1>}]} {
    %c0_i32 = arith.constant 0 : i32
    %0 = arith.cmpi eq, %arg1, %c0_i32 : i32
    %1 = arith.extui %0 : i1 to i32
    %c0_i32_0 = arith.constant 0 : i32
    %2 = arith.cmpi ne, %1, %c0_i32_0 : i32
    scf.if %2 {
      %cst_17 = arith.constant 0.000000e+00 : f32
      %20 = vector.broadcast %cst_17 : f32 to vector<4x1xf32>
      %c0_18 = arith.constant 0 : index
      %c0_19 = arith.constant 0 : index
      %21 = vector.load %arg6[%c0_18, %c0_19] : memref<4x1xf32, #tpu.memory_space<vmem>>, vector<4x1xf32>
      tpu.vector_store %arg6[%c0_18, %c0_19], %20 {strides = array<i32>} : memref<4x1xf32, #tpu.memory_space<vmem>>, vector<4x1xf32>,
      %cst_20 = arith.constant 0xFF800000 : f32
      %22 = vector.broadcast %cst_20 : f32 to vector<3x1xf32>
      %c0_21 = arith.constant 0 : index
      %c0_22 = arith.constant 0 : index
      %23 = vector.load %arg7[%c0_21, %c0_22] : memref<3x1xf32, #tpu.memory_space<vmem>>, vector<3x1xf32>
      tpu.vector_store %arg7[%c0_21, %c0_22], %22 {strides = array<i32>} : memref<3x1xf32, #tpu.memory_space<vmem>>, vector<3x1xf32>,
    } else {
    }
    %c0 = arith.constant 0 : index
    %c0_1 = arith.constant 0 : index
    %3 = vector.load %arg2[%c0, %c0_1] : memref<4x16xf32, #tpu.memory_space<vmem>>, vector<4x16xf32>
    %c0_2 = arith.constant 0 : index
    %c0_3 = arith.constant 0 : index
    %4 = vector.load %arg3[%c0_2, %c0_3] : memref<4x16xf32, #tpu.memory_space<vmem>>, vector<4x16xf32>
    %5 = arith.mulf %3, %4 : vector<4x16xf32>
    %c0_4 = arith.constant 0 : index
    %c0_5 = arith.constant 0 : index
    %6 = vector.load %arg6[%c0_4, %c0_5] : memref<4x1xf32, #tpu.memory_space<vmem>>, vector<4x1xf32>
    %cst = arith.constant dense<0.000000e+00> : vector<4xf32>
    %7 = vector.multi_reduction <add>, %5, %cst [1] : vector<4x16xf32> to vector<4xf32>
    %8 = vector.shape_cast %7 : vector<4xf32> to vector<4x1xf32>
    %9 = arith.addf %6, %8 : vector<4x1xf32>
    %c0_6 = arith.constant 0 : index
    %c0_7 = arith.constant 0 : index
    %10 = vector.load %arg6[%c0_6, %c0_7] : memref<4x1xf32, #tpu.memory_space<vmem>>, vector<4x1xf32>
    tpu.vector_store %arg6[%c0_6, %c0_7], %9 {strides = array<i32>} : memref<4x1xf32, #tpu.memory_space<vmem>>, vector<4x1xf32>,
    %c0_8 = arith.constant 0 : index
    %c0_9 = arith.constant 0 : index
    %11 = vector.load %arg4[%c0_8, %c0_9] : memref<3x16xf32, #tpu.memory_space<vmem>>, vector<3x16xf32>
    %c0_10 = arith.constant 0 : index
    %c0_11 = arith.constant 0 : index
    %12 = vector.load %arg7[%c0_10, %c0_11] : memref<3x1xf32, #tpu.memory_space<vmem>>, vector<3x1xf32>
    %cst_12 = arith.constant dense<0xFF800000> : vector<3xf32>
    %13 = vector.multi_reduction <maximumf>, %11, %cst_12 [1] : vector<3x16xf32> to vector<3xf32>
    %14 = vector.shape_cast %13 : vector<3xf32> to vector<3x1xf32>
    %15 = arith.maximumf %12, %14 : vector<3x1xf32>
    %c0_13 = arith.constant 0 : index
    %c0_14 = arith.constant 0 : index
    %16 = vector.load %arg7[%c0_13, %c0_14] : memref<3x1xf32, #tpu.memory_space<vmem>>, vector<3x1xf32>
    tpu.vector_store %arg7[%c0_13, %c0_14], %15 {strides = array<i32>} : memref<3x1xf32, #tpu.memory_space<vmem>>, vector<3x1xf32>,
    %c0_i32_15 = arith.constant 0 : i32
    %17 = arith.cmpi eq, %arg1, %c0_i32_15 : i32
    %18 = arith.extui %17 : i1 to i32
    %c0_i32_16 = arith.constant 0 : i32
    %19 = arith.cmpi ne, %18, %c0_i32_16 : i32
    scf.if %19 {
      %c0_17 = arith.constant 0 : index
      %c0_18 = arith.constant 0 : index
      %20 = vector.load %arg6[%c0_17, %c0_18] : memref<4x1xf32, #tpu.memory_space<vmem>>, vector<4x1xf32>
      %c0_19 = arith.constant 0 : index
      %c0_20 = arith.constant 0 : index
      %21 = vector.load %arg7[%c0_19, %c0_20] : memref<3x1xf32, #tpu.memory_space<vmem>>, vector<3x1xf32>
      %cst_21 = arith.constant 1.000000e+00 : f32
      %22 = vector.broadcast %cst_21 : f32 to vector<4x1xf32>
      %23 = arith.subf %22, %20 : vector<4x1xf32>
      %24 = tpu.transpose %21, [1, 0] : vector<3x1xf32> -> vector<1x3xf32>
      %25 = vector.broadcast %23 : vector<4x1xf32> to vector<4x3xf32>
      %26 = vector.broadcast %24 : vector<1x3xf32> to vector<4x3xf32>
      %27 = arith.addf %25, %26 : vector<4x3xf32>
      %cst_22 = arith.constant 0.000000e+00 : f32
      %28 = vector.broadcast %cst_22 : f32 to vector<4x3xf32>
      %29 = arith.maximumf %27, %28 : vector<4x3xf32>
      %30 = vector.shape_cast %29 : vector<4x3xf32> to vector<1x4x3xf32>
      %cst_23 = arith.constant dense<0.000000e+00> : vector<1xf32>
      %31 = vector.multi_reduction <add>, %30, %cst_23 [1, 2] : vector<1x4x3xf32> to vector<1xf32>
      %32 = vector.shape_cast %31 : vector<1xf32> to vector<1x1x1xf32>
      %33 = vector.extract %32[0, 0, 0] : f32 from vector<1x1x1xf32>
      %cst_24 = arith.constant 0.0833333358 : f32
      %34 = arith.mulf %33, %cst_24 : f32
      %c0_25 = arith.constant 0 : index
      %c0_26 = arith.constant 0 : index
      %35 = memref.load %arg5[%c0_25, %c0_26] : memref<1x1xf32, #tpu.memory_space<smem>>
      memref.store %34, %arg5[%c0_25, %c0_26] : memref<1x1xf32, #tpu.memory_space<smem>>
    } else {
    }
    return
  }
  func.func @transform_0(%arg0: i32, %arg1: i32) -> (i32, i32) {
    %c0_i32 = arith.constant 0 : i32
    %0 = arith.minsi %arg1, %c0_i32 : i32
    %c0_i32_0 = arith.constant 0 : i32
    return %arg0, %0 : i32, i32
  }
  func.func @transform_1(%arg0: i32, %arg1: i32) -> (i32, i32) {
    %c0_i32 = arith.constant 0 : i32
    %0 = arith.minsi %arg1, %c0_i32 : i32
    %c0_i32_0 = arith.constant 0 : i32
    return %arg0, %0 : i32, i32
  }
  func.func @transform_2(%arg0: i32, %arg1: i32) -> (i32, i32) {
    %c0_i32 = arith.constant 0 : i32
    %0 = arith.minsi %arg1, %c0_i32 : i32
    %c0_i32_0 = arith.constant 0 : i32
    %c0_i32_1 = arith.constant 0 : i32
    return %c0_i32_0, %0 : i32, i32
  }
  func.func @transform_3(%arg0: i32, %arg1: i32) -> (i32, i32) {
    %c0_i32 = arith.constant 0 : i32
    %c0_i32_0 = arith.constant 0 : i32
    return %arg0, %c0_i32 : i32, i32
  }
}

</mosaic_0001>

<bundles_post_ra>
// kernel: tpu_custom_call.1
= control target key start
LH: loop header
LB: loop body
LE: loop exit
PB: predicated region body
PF: predicated region fallthrough
CT: control target
= control target key end

     0   :  { %8 = vsyncpa [#allocation5], 0  ;;  %s303_s0 = inlined_call_operand.hbm [shape: f32[4,16], index: 0, kind: input, shape index: {}]   ;;  %s304_s1 = inlined_call_operand.hbm [shape: f32[4,16], index: 1, kind: input, shape index: {}]   ;;  %s305_s2 = inlined_call_operand.hbm [shape: f32[3,16], index: 2, kind: input, shape index: {}]   ;;  %s306_s3 = inlined_call_operand.hbm [shape: f32[1,1], index: 3, kind: output, shape index: {}]  }
   0x1   :  { %9 = vsyncpa [#allocation8], 0  ;;  %s27_s14 = sshll.u32 %s304_s1, 4  ;;  %s28_s14 = int_to_ptr.hbm [resolvable:$true] %s27_s14 }
   0x2   :  { %10 = vsyncpa [#allocation6], 0  ;;  %s262_s15 = smov [#allocation7]   ;;  %s16_s19 = sshll.u32 %s303_s0, 4  ;;  %s17_s19 = int_to_ptr.hbm [resolvable:$true] %s16_s19 }
   0x3   :  { %s29_s16 = sshll.u32 %s262_s15, 4  ;;  %s263_s20 = smov [#allocation4]   ;;  %s30_s16 = int_to_ptr.vmem [resolvable:$true] %s29_s16 }
   0x4   :  { %32 = dma.hbm_to_vmem [thread:$0]  %s28_s14, 64, %s30_s16, [#allocation8]  }
   0x5   :  { %s18_s21 = sshll.u32 %s263_s20, 4  ;;  %s38_s24 = sshll.u32 %s305_s2, 4  ;;  %s19_s21 = int_to_ptr.vmem [resolvable:$true] %s18_s21  ;;  %s39_s24 = int_to_ptr.hbm [resolvable:$true] %s38_s24 }
   0x6   :  { %21 = dma.hbm_to_vmem [thread:$0]  %s17_s19, 64, %s19_s21, [#allocation5]  }
   0x7   :  { %s264_s1 = smov [#allocation9]  }
   0x8   :  { %s40_s25 = sshll.u32 %s264_s1, 4  ;;  %s41_s25 = int_to_ptr.vmem [resolvable:$true] %s40_s25 }
   0x9   :  { %43 = dma.hbm_to_vmem [thread:$0]  %s39_s24, 64, %s41_s25, [#allocation8]  }
   0xa   :  { %256 = dma.done.wait [#allocation5], 64  }
   0xb   :  { %257 = vsyncadd [#allocation5], 4294967232 }
   0xc   :  { %258 = dma.done.wait [#allocation8], 128  }
   0xd   :  { %259 = vsyncadd [#allocation8], 4294967168  ;;  %vm60_vm0 = vcmask 3072   ;;  %v265_v0 = vmov 0.0   ;;  %v64_v1 = vld [vmem:[#allocation4] sm:$0xf] }
   0xe   :  { %61 = vst.msk [vmem:[#allocation2] sm:$0xf] %vm60_vm0, %v265_v0  ;;  %v65_v2 = vld [vmem:[#allocation7] sm:$0xf]  ;;  %vm68_vm1 = vcmask 125952   ;;  %vm77_vm2 = vcmask 124928  }
   0xf   :  { %v66_v3 = vmul.f32 %v65_v2, %v64_v1  ;;  %v75_v5 = vld [vmem:[#allocation9] sm:$0x7]  ;;  %v266_v7 = vmov 0   ;;  %vm62_vm3 = vcmask 2048   ;;  %v267_v8 = vmov -inf   ;;  %s149_s26 = sshll.u32 %s306_s3, 4  ;;  %s150_s26 = int_to_ptr.hbm [resolvable:$true] %s149_s26 }
  0x10   :  { %v78_v6 = vsel %vm77_vm2, %v75_v5, -inf  ;;  %170 = vset.pattern.permute.xlu1 %v266_v7  ;;  %171 = vset.pattern.permute.xlu0 %v266_v7  ;;  %63 = vst.msk [vmem:[#allocation3] sm:$0x7] %vm62_vm3, %v267_v8  ;;  %vm130_vm4 = vcmask 19456   ;;  %s268_s29 = smov [#allocation10]  }
  0x11   :  { %v69_v4 = vsel %vm68_vm1, %v66_v3, 0.0 }
  0x12   :  { %70 = vadd.xlane.f32.xlu0 %v69_v4 }
  0x15   :  { %v67_v9 = vld [vmem:[#allocation2] sm:$0xf] }
  0x17   :  { %v76_v12 = vld [vmem:[#allocation3] sm:$0x7] }
  0x1a   :  { %79 = vmax.xlane.f32.xlu0 %v78_v6 }
  0x85   :  { %v71_v10 = vpop.xlane.xlu0 %70 }
  0x86   :  { %v72_v11 = vadd.f32 %v71_v10, %v67_v9 }
  0x88   :  { %74 = vst.msk [vmem:[#allocation2] sm:$0xf] %vm60_vm0, %v72_v11 }
  0x8d   :  { %v80_v13 = vpop.xlane.xlu0 %79 }
  0x8e   :  { %v81_v14 = vmax.f32 %v76_v12, %v80_v13 }
  0x8f   :  { %v87_v15 = vld [vmem:[#allocation2] sm:$0xf] }
  0x90   :  { %v89_v16 = vsub.f32 1.0, %v87_v15  ;;  %83 = vst.msk [vmem:[#allocation3] sm:$0x7] %vm62_vm3, %v81_v14 }
  0x92   :  { %124 = vperm.xlu1 %170, %v89_v16  }
  0x97   :  { %v88_v17 = vld [vmem:[#allocation3] sm:$0x7] }
  0xc7   :  { %90 = vxpose.xlu1.b32.start.end [1/1] (short) (narrow) %v88_v17, 8 }
 0x104   :  { %v125_v18 = vpop.permute.xlu1 %124 }
 0x16b   :  { %v106_v19 = vpop.trf.xlu1 }
 0x16c   :  { %v127_v20 = vperm.slane %v106_v19, 0 }
 0x16e   :  { %v128_v21 = vadd.f32 %v127_v20, %v125_v18 }
 0x170   :  { %v129_v22 = vmax.f32 %v128_v21, 0.0 }
 0x172   :  { %v131_v23 = vsel %vm130_vm4, %v129_v22, 0.0 }
 0x173   :  { %132 = vadd.xlane.f32.xlu2 %v131_v23 }
 0x1e6   :  { %v133_v24 = vpop.xlane.xlu2 %132 }
 0x1e7   :  { %v134_v25 = vrot.slane %v133_v24, 4 }
 0x1e9   :  { %v135_v26 = vadd.f32 %v134_v25, %v133_v24 }
 0x1eb   :  { %v136_v27 = vrot.slane %v135_v26, 2 }
 0x1ed   :  { %v137_v28 = vadd.f32 %v136_v27, %v135_v26 }
 0x1ef   :  { %v138_v29 = vrot.slane %v137_v28, 1 }
 0x1f1   :  { %v139_v30 = vadd.f32 %v138_v29, %v137_v28 }
 0x1f3   :  { %161 = vpush %v139_v30 }
 0x224   :  { %s162_s27 = spop %161 }
 0x225   :  { %s141_s28 = smul.f32 0.083333336, %s162_s27 }
 0x227   :  { %143 = sst [smem:[#allocation10]] %s141_s28 }
 0x228   :  { %152 = dma.smem_to_hbm %s268_s29, 16, %s150_s26, [#allocation6]  }
 0x229   :  { %260 = dma.done.wait [#allocation6], 16  }
 0x22a   :  { %261 = vsyncadd [#allocation6], 4294967280 }
 0x22b   :  { %157 = sfence }
 0x22c   :  { %158 = vsyncpa [#allocation5], 1 }
 0x22d   :  { %159 = vsyncpa [#allocation8], 1 }
 0x22e   :  { %160 = vsyncpa [#allocation6], 1 }

</bundles_post_ra>
